<compile_context>
chip_gen: v7x
topology: tpu7x:2x2x1
jax: 0.10.0
libtpu: 0.0.40
codegen_flags: <defaults>
</compile_context>

<pallas_src>
import functools

import jax
import jax.numpy as jnp
from jax.experimental import pallas as pl
from jax.experimental.pallas import tpu as pltpu

BN_EPS = 1e-3
LANE = 128


def _round_up(x, m):
    return (x + m - 1) // m * m


def _vmem_budget_bytes():
    """Scoped-VMEM budget: ~75% of physical VMEM (96 MiB v5e/v6e, 48 MiB v7x)."""
    cap = 64 * 1024 * 1024  # conservative fallback (v7x per-TC VMEM)
    try:
        info = pltpu.get_tpu_info()
        cap = int(getattr(info, "vmem_capacity_bytes", cap))
    except Exception:
        pass
    return min((cap * 3) // 4, 120 * 1024 * 1024)


# ----------------------------------------------------------------------------
# Pallas kernels
# ----------------------------------------------------------------------------
def conv_stats_kernel(p_ref, w_ref, y_ref, stats_ref, acc_ref):
    """One (TM x TK) @ (TK x CP) MXU step of the conv GEMM + BN partial stats.

    Grid = (M tiles [parallel], K tiles [arbitrary, reduction]).
    p_ref:     (TM, TK)    bf16 im2col patch tile
    w_ref:     (TK, CP)    bf16 weight tile
    y_ref:     (TM, CP)    bf16 conv output tile (block index constant over K)
    stats_ref: (1, 2, CP)  f32 per-M-tile [sum; sum_sq] partials
    acc_ref:   (TM, CP)    f32 accumulator scratch
    """
    k = pl.program_id(1)

    @pl.when(k == 0)
    def _init():
        acc_ref[...] = jnp.zeros_like(acc_ref)

    acc_ref[...] += jnp.dot(p_ref[...], w_ref[...],
                            preferred_element_type=jnp.float32)
    y_ref[...] = acc_ref[...].astype(y_ref.dtype)

    @pl.when(k == pl.num_programs(1) - 1)
    def _stats():
        acc = acc_ref[...]
        s = jnp.sum(acc, axis=0, keepdims=True)            # (1, CP)
        sq = jnp.sum(acc * acc, axis=0, keepdims=True)      # (1, CP)
        stats_ref[0] = jnp.concatenate([s, sq], axis=0)     # (2, CP)


def scale_bias_relu_kernel(y_ref, sb_ref, o_ref):
    """relu(y * scale + bias) with folded-BatchNorm per-channel scale/bias."""
    y = y_ref[...].astype(jnp.float32)
    o_ref[...] = jnp.maximum(y * sb_ref[0:1, :] + sb_ref[1:2, :], 0.0)


# ----------------------------------------------------------------------------
# Glue: bf16 im2col, tile selection, wrapper around pallas_call
# ----------------------------------------------------------------------------
def _im2col_bf16(x_nhwc_bf16, ksize, stride, padding):
    n, h, w, c = x_nhwc_bf16.shape
    xp = jnp.pad(x_nhwc_bf16,
                 ((0, 0), (padding, padding), (padding, padding), (0, 0)))
    ho = (h + 2 * padding - ksize) // stride + 1
    wo = (w + 2 * padding - ksize) // stride + 1
    cols = []
    for dh in range(ksize):
        for dw in range(ksize):
            cols.append(
                xp[:, dh:dh + stride * (ho - 1) + 1:stride,
                      dw:dw + stride * (wo - 1) + 1:stride, :])
    patches = jnp.stack(cols, axis=3)            # (N, Ho, Wo, k*k, C), bf16
    return patches.reshape(n * ho * wo, ksize * ksize * c), (n, ho, wo)


def _pick_tiles(m, kk, cp, budget):
    """Generation-aware tile selection for both passes."""
    kkp = _round_up(kk, LANE)
    q = kkp // LANE
    tk = LANE
    for d in (4, 3, 2):                         # largest K tile that divides kkp
        if q % d == 0:
            tk = LANE * d
            break

    tm1 = LANE
    for cand in (1024, 512, 256, 128):          # largest M tile fitting VMEM
        need = (2 * cand * tk * 2               # patch tile, dbl-buffered, bf16
                + 2 * tk * cp * 2               # weight tile, dbl-buffered, bf16
                + 2 * cand * cp * 2             # y tile, dbl-buffered, bf16
                + cand * cp * 4                 # f32 accumulator scratch
                + 4 * 2 * cp * 4)               # stats blocks
        if need <= int(budget * 0.8):
            tm1 = cand
            break
    tm1 = min(tm1, _round_up(m, LANE))

    # Pass 2 is pure elementwise HBM-bound work -> up to 4x larger row tile.
    f = 4
    while f > 1 and 12 * (tm1 * f) * cp > int(budget * 0.8):
        f //= 2
    tm2 = min(tm1 * f, _round_up(m, tm1))       # multiple of tm1 by construction
    mp = _round_up(m, tm2)                      # multiple of both tm1 and tm2
    return tm1, tm2, tk, kkp, mp


def basic_conv2d(x_nchw, weight, gamma, beta, *, stride, padding):
    """_BasicConv2d forward. NCHW in / NCHW out (f32)."""
    cout, cin, k, _ = weight.shape

    # Cast to bf16 before transpose/im2col so the patch intermediate is bf16.
    x_nhwc = jnp.transpose(x_nchw.astype(jnp.bfloat16), (0, 2, 3, 1))
    # TODO(synk): implicit GEMM (shifted in-kernel loads / manual DMA over the
    # k*k offsets) would avoid materializing the k*k-expanded patch array.
    patches, (n, ho, wo) = _im2col_bf16(x_nhwc, k, stride, padding)
    m, kk = patches.shape

    cp = _round_up(cout, LANE)
    budget = _vmem_budget_bytes()
    tm1, tm2, tk, kkp, mp = _pick_tiles(m, kk, cp, budget)

    # Pad M / K with zeros (zero rows/cols contribute nothing to GEMM or stats).
    patches = jnp.pad(patches, ((0, mp - m), (0, kkp - kk)))
    # PyTorch weight (Cout, Cin, kh, kw) -> (kh*kw*Cin, Cout) matching the
    # (dh, dw, c) im2col flattening order, then pad K -> kkp, Cout -> cp.
    w_mat = jnp.transpose(weight, (2, 3, 1, 0)).reshape(k * k * cin, cout)
    w_mat = jnp.pad(w_mat.astype(jnp.bfloat16),
                    ((0, kkp - kk), (0, cp - cout)))

    n_m, n_k = mp // tm1, kkp // tk

    # Pass 1: K-tiled conv GEMM (megacore-parallel over M) + per-tile BN stats.
    y, stats = pl.pallas_call(
        conv_stats_kernel,
        grid=(n_m, n_k),
        in_specs=[
            pl.BlockSpec((tm1, tk), lambda i, j: (i, j)),
            pl.BlockSpec((tk, cp), lambda i, j: (j, 0)),
        ],
        out_specs=[
            pl.BlockSpec((tm1, cp), lambda i, j: (i, 0)),
            pl.BlockSpec((1, 2, cp), lambda i, j: (i, 0, 0)),
        ],
        out_shape=[
            jax.ShapeDtypeStruct((mp, cp), jnp.bfloat16),
            jax.ShapeDtypeStruct((n_m, 2, cp), jnp.float32),
        ],
        scratch_shapes=[pltpu.VMEM((tm1, cp), jnp.float32)],
        compiler_params=pltpu.CompilerParams(
            dimension_semantics=("parallel", "arbitrary"),
            vmem_limit_bytes=budget),
    )(patches, w_mat)

    # Fold training-mode BatchNorm (batch stats, biased variance, eps=1e-3)
    # into one per-channel scale + bias; reduce the per-tile partials in f32.
    total = jnp.sum(stats, axis=0)                         # (2, cp)
    mean = total[0:1, :] / float(m)
    var = jnp.maximum(total[1:2, :] / float(m) - mean * mean, 0.0)
    gamma_p = jnp.pad(gamma.reshape(1, cout), ((0, 0), (0, cp - cout)),
                      constant_values=1.0)
    beta_p = jnp.pad(beta.reshape(1, cout), ((0, 0), (0, cp - cout)))
    scale = gamma_p * jax.lax.rsqrt(var + BN_EPS)
    bias = beta_p - mean * scale
    sb = jnp.concatenate([scale, bias], axis=0)            # (2, cp) packed

    # Pass 2: big-tile, megacore-parallel scale + bias + ReLU.
    out = pl.pallas_call(
        scale_bias_relu_kernel,
        grid=(mp // tm2,),
        in_specs=[
            pl.BlockSpec((tm2, cp), lambda i: (i, 0)),
            pl.BlockSpec((2, cp), lambda i: (0, 0)),
        ],
        out_specs=pl.BlockSpec((tm2, cp), lambda i: (i, 0)),
        out_shape=jax.ShapeDtypeStruct((mp, cp), jnp.float32),
        compiler_params=pltpu.CompilerParams(
            dimension_semantics=("parallel",),
            vmem_limit_bytes=budget),
    )(y, sb)

    # TODO(synk): the NCHW epilogue transpose is still a separate XLA pass;
    # folding it into pass 2 (channel-major output blocks + in-kernel XLU
    # transpose) would remove one full read+write of the output.
    out = out[:m, :cout].reshape(n, ho, wo, cout)
    return jnp.transpose(out, (0, 3, 1, 2))


# ----------------------------------------------------------------------------
# Parameter init (mirrors the PyTorch __init__)
# ----------------------------------------------------------------------------
def _init_basic_conv(key, cin, cout, k):
    kw_key, g_key = jax.random.split(key)
    fan_in = cin * k * k
    std = (2.0 / fan_in) ** 0.5          # kaiming_normal_, a=0, mode='fan_in'
    weight = jax.random.normal(kw_key, (cout, cin, k, k), jnp.float32) * std
    gamma = 1.0 + 0.02 * jax.random.normal(g_key, (cout,), jnp.float32)
    beta = jnp.zeros((cout,), jnp.float32)
    return weight, gamma, beta


# ----------------------------------------------------------------------------
# Pure-JAX reference (for correctness check)
# ----------------------------------------------------------------------------
def _reference(x_nchw, weight, gamma, beta, stride, padding):
    y = jax.lax.conv_general_dilated(
        x_nchw, weight, window_strides=(stride, stride),
        padding=[(padding, padding), (padding, padding)],
        dimension_numbers=("NCHW", "OIHW", "NCHW"))
    mean = jnp.mean(y, axis=(0, 2, 3), keepdims=True)
    var = jnp.mean((y - mean) ** 2, axis=(0, 2, 3), keepdims=True)
    yh = (y - mean) * jax.lax.rsqrt(var + BN_EPS)
    yh = yh * gamma.reshape(1, -1, 1, 1) + beta.reshape(1, -1, 1, 1)
    return jnp.maximum(yh, 0.0)


# ----------------------------------------------------------------------------
if __name__ == "__main__":
    key = jax.random.PRNGKey(0)
    k_x, k_p = jax.random.split(key)

    # Small shapes: batch=2, 4 -> 8 channels, 16x16 spatial, 3x3 s1 p1 conv.
    n, cin, h, w = 2, 4, 16, 16
    cout, ksize, stride, padding = 8, 3, 1, 1

    x = jax.random.normal(k_x, (n, cin, h, w), jnp.float32)
    weight, gamma, beta = _init_basic_conv(k_p, cin, cout, ksize)

    fwd = jax.jit(functools.partial(basic_conv2d, stride=stride, padding=padding))
    out = jax.block_until_ready(fwd(x, weight, gamma, beta))

    assert out.shape == (n, cout, h, w), out.shape
    assert bool(jnp.all(jnp.isfinite(out)))

    ref = _reference(x, weight, gamma, beta, stride, padding)
    err = float(jnp.max(jnp.abs(out - ref)))
    assert err < 0.15, f"max abs err vs reference: {err}"

    print("KERNEL_OK")
</pallas_src>

<mosaic_0001>
module attributes {stable_mosaic.version = 11 : i64} {
  func.func @conv_stats_kernel(%arg0: i32, %arg1: i32, %arg2: memref<512x128xbf16, #tpu.memory_space<vmem>>, %arg3: memref<128x128xbf16, #tpu.memory_space<vmem>>, %arg4: memref<512x128xbf16, #tpu.memory_space<vmem>>, %arg5: memref<1x2x128xf32, #tpu.memory_space<vmem>>, %arg6: memref<512x128xf32, #tpu.memory_space<vmem>>) attributes {dimension_semantics = [#tpu.dimension_semantics<parallel>, #tpu.dimension_semantics<arbitrary>], iteration_bounds = array<i64: 1, 1>, scalar_prefetch = 0 : i64, scratch_operands = 1 : i64, tpu.core_type = #tpu.core_type<tc>, window_params = [{transform_indices = @transform_0, window_bounds = array<i64: 512, 128>}, {transform_indices = @transform_1, window_bounds = array<i64: 128, 128>}, {transform_indices = @transform_2, window_bounds = array<i64: 512, 128>}, {transform_indices = @transform_3, window_bounds = array<i64: 1, 2, 128>}]} {
    %c0_i32 = arith.constant 0 : i32
    %0 = arith.cmpi eq, %arg1, %c0_i32 : i32
    %1 = arith.extui %0 : i1 to i32
    %c0_i32_0 = arith.constant 0 : i32
    %2 = arith.cmpi ne, %1, %c0_i32_0 : i32
    scf.if %2 {
      %cst_14 = arith.constant 0.000000e+00 : f32
      %15 = vector.broadcast %cst_14 : f32 to vector<512x128xf32>
      %c0_15 = arith.constant 0 : index
      %c0_16 = arith.constant 0 : index
      %16 = vector.load %arg6[%c0_15, %c0_16] : memref<512x128xf32, #tpu.memory_space<vmem>>, vector<512x128xf32>
      tpu.vector_store %arg6[%c0_15, %c0_16], %15 {strides = array<i32>} : memref<512x128xf32, #tpu.memory_space<vmem>>, vector<512x128xf32>,
    } else {
    }
    %c0 = arith.constant 0 : index
    %c0_1 = arith.constant 0 : index
    %3 = vector.load %arg6[%c0, %c0_1] : memref<512x128xf32, #tpu.memory_space<vmem>>, vector<512x128xf32>
    %c0_2 = arith.constant 0 : index
    %c0_3 = arith.constant 0 : index
    %4 = vector.load %arg2[%c0_2, %c0_3] : memref<512x128xbf16, #tpu.memory_space<vmem>>, vector<512x128xbf16>
    %c0_4 = arith.constant 0 : index
    %c0_5 = arith.constant 0 : index
    %5 = vector.load %arg3[%c0_4, %c0_5] : memref<128x128xbf16, #tpu.memory_space<vmem>>, vector<128x128xbf16>
    %cst = arith.constant dense<0.000000e+00> : vector<512x128xf32>
    %6 = tpu.matmul %4, %5, %cst {dimension_numbers = #tpu.dot_dimension_numbers<[1], [0], [0], [1], [0, 0, 1, 1], [], []>} : vector<512x128xbf16>, vector<128x128xbf16>, vector<512x128xf32> -> vector<512x128xf32>
    %7 = arith.addf %3, %6 : vector<512x128xf32>
    %c0_6 = arith.constant 0 : index
    %c0_7 = arith.constant 0 : index
    %8 = vector.load %arg6[%c0_6, %c0_7] : memref<512x128xf32, #tpu.memory_space<vmem>>, vector<512x128xf32>
    tpu.vector_store %arg6[%c0_6, %c0_7], %7 {strides = array<i32>} : memref<512x128xf32, #tpu.memory_space<vmem>>, vector<512x128xf32>,
    %c0_8 = arith.constant 0 : index
    %c0_9 = arith.constant 0 : index
    %9 = vector.load %arg6[%c0_8, %c0_9] : memref<512x128xf32, #tpu.memory_space<vmem>>, vector<512x128xf32>
    %10 = arith.truncf %9 : vector<512x128xf32> to vector<512x128xbf16>
    %c0_10 = arith.constant 0 : index
    %c0_11 = arith.constant 0 : index
    %11 = vector.load %arg4[%c0_10, %c0_11] : memref<512x128xbf16, #tpu.memory_space<vmem>>, vector<512x128xbf16>
    tpu.vector_store %arg4[%c0_10, %c0_11], %10 {strides = array<i32>} : memref<512x128xbf16, #tpu.memory_space<vmem>>, vector<512x128xbf16>,
    %c0_i32_12 = arith.constant 0 : i32
    %12 = arith.cmpi eq, %arg1, %c0_i32_12 : i32
    %13 = arith.extui %12 : i1 to i32
    %c0_i32_13 = arith.constant 0 : i32
    %14 = arith.cmpi ne, %13, %c0_i32_13 : i32
    scf.if %14 {
      %c0_14 = arith.constant 0 : index
      %c0_15 = arith.constant 0 : index
      %15 = vector.load %arg6[%c0_14, %c0_15] : memref<512x128xf32, #tpu.memory_space<vmem>>, vector<512x128xf32>
      %cst_16 = arith.constant dense<0.000000e+00> : vector<128xf32>
      %16 = vector.multi_reduction <add>, %15, %cst_16 [0] : vector<512x128xf32> to vector<128xf32>
      %17 = vector.shape_cast %16 : vector<128xf32> to vector<1x128xf32>
      %18 = arith.mulf %15, %15 : vector<512x128xf32>
      %cst_17 = arith.constant dense<0.000000e+00> : vector<128xf32>
      %19 = vector.multi_reduction <add>, %18, %cst_17 [0] : vector<512x128xf32> to vector<128xf32>
      %20 = vector.shape_cast %19 : vector<128xf32> to vector<1x128xf32>
      %21 = tpu.concatenate %17, %20 in 0 : vector<1x128xf32>, vector<1x128xf32> -> vector<2x128xf32>
      %c0_18 = arith.constant 0 : index
      %c0_19 = arith.constant 0 : index
      %c0_20 = arith.constant 0 : index
      %22 = vector.load %arg5[%c0_18, %c0_19, %c0_20] : memref<1x2x128xf32, #tpu.memory_space<vmem>>, vector<1x2x128xf32>
      %23 = vector.shape_cast %22 : vector<1x2x128xf32> to vector<2x128xf32>
      %24 = vector.shape_cast %21 : vector<2x128xf32> to vector<1x2x128xf32>
      tpu.vector_store %arg5[%c0_18, %c0_19, %c0_20], %24 {strides = array<i32>} : memref<1x2x128xf32, #tpu.memory_space<vmem>>, vector<1x2x128xf32>,
    } else {
    }
    return
  }
  func.func @transform_0(%arg0: i32, %arg1: i32) -> (i32, i32) {
    %c0_i32 = arith.constant 0 : i32
    return %arg0, %arg1 : i32, i32
  }
  func.func @transform_1(%arg0: i32, %arg1: i32) -> (i32, i32) {
    %c0_i32 = arith.constant 0 : i32
    %c0_i32_0 = arith.constant 0 : i32
    return %arg1, %c0_i32 : i32, i32
  }
  func.func @transform_2(%arg0: i32, %arg1: i32) -> (i32, i32) {
    %c0_i32 = arith.constant 0 : i32
    %c0_i32_0 = arith.constant 0 : i32
    return %arg0, %c0_i32 : i32, i32
  }
  func.func @transform_3(%arg0: i32, %arg1: i32) -> (i32, i32, i32) {
    %c0_i32 = arith.constant 0 : i32
    %c0_i32_0 = arith.constant 0 : i32
    %c0_i32_1 = arith.constant 0 : i32
    return %arg0, %c0_i32, %c0_i32_0 : i32, i32, i32
  }
}

module attributes {stable_mosaic.version = 11 : i64} {
  func.func @scale_bias_relu_kernel(%arg0: i32, %arg1: memref<512x128xbf16, #tpu.memory_space<vmem>>, %arg2: memref<2x128xf32, #tpu.memory_space<vmem>>, %arg3: memref<512x128xf32, #tpu.memory_space<vmem>>) attributes {dimension_semantics = [#tpu.dimension_semantics<parallel>], iteration_bounds = array<i64: 1>, scalar_prefetch = 0 : i64, scratch_operands = 0 : i64, tpu.core_type = #tpu.core_type<tc>, window_params = [{transform_indices = @transform_0, window_bounds = array<i64: 512, 128>}, {pipeline_mode = #tpu.pipeline_mode<synchronous>, transform_indices = @transform_1, window_bounds = array<i64: 2, 128>}, {transform_indices = @transform_2, window_bounds = array<i64: 512, 128>}]} {
    %c0 = arith.constant 0 : index
    %c0_0 = arith.constant 0 : index
    %0 = vector.load %arg1[%c0, %c0_0] : memref<512x128xbf16, #tpu.memory_space<vmem>>, vector<512x128xbf16>
    %1 = arith.extf %0 : vector<512x128xbf16> to vector<512x128xf32>
    %c0_1 = arith.constant 0 : index
    %c0_2 = arith.constant 0 : index
    %2 = vector.load %arg2[%c0_1, %c0_2] : memref<2x128xf32, #tpu.memory_space<vmem>>, vector<1x128xf32>
    %3 = vector.broadcast %2 : vector<1x128xf32> to vector<512x128xf32>
    %4 = arith.mulf %1, %3 : vector<512x128xf32>
    %c1 = arith.constant 1 : index
    %c0_3 = arith.constant 0 : index
    %5 = vector.load %arg2[%c1, %c0_3] : memref<2x128xf32, #tpu.memory_space<vmem>>, vector<1x128xf32>
    %6 = vector.broadcast %5 : vector<1x128xf32> to vector<512x128xf32>
    %7 = arith.addf %4, %6 : vector<512x128xf32>
    %cst = arith.constant 0.000000e+00 : f32
    %8 = vector.broadcast %cst : f32 to vector<512x128xf32>
    %9 = arith.maximumf %7, %8 : vector<512x128xf32>
    %c0_4 = arith.constant 0 : index
    %c0_5 = arith.constant 0 : index
    %10 = vector.load %arg3[%c0_4, %c0_5] : memref<512x128xf32, #tpu.memory_space<vmem>>, vector<512x128xf32>
    tpu.vector_store %arg3[%c0_4, %c0_5], %9 {strides = array<i32>} : memref<512x128xf32, #tpu.memory_space<vmem>>, vector<512x128xf32>,
    return
  }
  func.func @transform_0(%arg0: i32) -> (i32, i32) {
    %c0_i32 = arith.constant 0 : i32
    %c0_i32_0 = arith.constant 0 : i32
    return %arg0, %c0_i32 : i32, i32
  }
  func.func @transform_1(%arg0: i32) -> (i32, i32) {
    %c0_i32 = arith.constant 0 : i32
    %c0_i32_0 = arith.constant 0 : i32
    %c0_i32_1 = arith.constant 0 : i32
    return %c0_i32, %c0_i32_0 : i32, i32
  }
  func.func @transform_2(%arg0: i32) -> (i32, i32) {
    %c0_i32 = arith.constant 0 : i32
    %c0_i32_0 = arith.constant 0 : i32
    return %arg0, %c0_i32 : i32, i32
  }
}

</mosaic_0001>

<bundles_post_ra>
// kernel: basic_conv2d.3
= control target key start
LH: loop header
LB: loop body
LE: loop exit
PB: predicated region body
PF: predicated region fallthrough
CT: control target
= control target key end

     0   :  { %s1011_s0 = inlined_call_operand.vmem [shape: bf16[512,128], index: 0, kind: input, shape index: {}]   ;;  %s1012_s1 = inlined_call_operand.vmem [shape: f32[2,128], index: 1, kind: input, shape index: {}]   ;;  %s1013_s2 = inlined_call_operand.vmem [shape: f32[512,128], index: 2, kind: output, shape index: {}]  }
   0x1   :  { %v412_v0 = vld [vmem:[%s1011_s0] sm:$0xff]   ;;  %v539_v4 = vld [vmem:[%s1011_s0 + $0x8] sm:$0xff]   ;;  %v540_v5 = vld [vmem:[%s1011_s0 + $0x10] sm:$0xff]  }
   0x2   :  { %v591_v1 = vld [vmem:[%s1012_s1] ss:$0 sm:$0xff]  ;;  %v413_v2 = vunpack.c.l.bf16 %v412_v0  ;;  %v414_v3 = vunpack.c.h.bf16 %v412_v0  ;;  %v541_v6 = vld [vmem:[%s1011_s0 + $0x18] sm:$0xff]   ;;  %v605_v7 = vld [vmem:[%s1012_s1 + $0x1] ss:$0 sm:$0xff]  ;;  %v417_v8 = vunpack.c.l.bf16 %v539_v4  ;;  %v418_v9 = vunpack.c.h.bf16 %v539_v4 }
   0x3   :  { %v421_v10 = vunpack.c.l.bf16 %v540_v5  ;;  %v422_v11 = vunpack.c.h.bf16 %v540_v5  ;;  %v425_v14 = vunpack.c.l.bf16 %v541_v6  ;;  %v426_v15 = vunpack.c.h.bf16 %v541_v6  ;;  %v542_v28 = vld [vmem:[%s1011_s0 + $0x20] sm:$0xff]   ;;  %v543_v33 = vld [vmem:[%s1011_s0 + $0x28] sm:$0xff]   ;;  %v544_v34 = vld [vmem:[%s1011_s0 + $0x30] sm:$0xff]  }
   0x4   :  { %v144_v12 = vmul.f32 %v413_v2, %v591_v1  ;;  %v145_v13 = vmul.f32 %v414_v3, %v591_v1  ;;  %v146_v16 = vmul.f32 %v417_v8, %v591_v1  ;;  %v147_v17 = vmul.f32 %v418_v9, %v591_v1  ;;  %v545_v39 = vld [vmem:[%s1011_s0 + $0x38] sm:$0xff]   ;;  %v546_v0 = vld [vmem:[%s1011_s0 + $0x40] sm:$0xff]   ;;  %v547_v6 = vld [vmem:[%s1011_s0 + $0x48] sm:$0xff]  }
   0x5   :  { %v148_v18 = vmul.f32 %v421_v10, %v591_v1  ;;  %v149_v19 = vmul.f32 %v422_v11, %v591_v1  ;;  %v150_v22 = vmul.f32 %v425_v14, %v591_v1  ;;  %v151_v23 = vmul.f32 %v426_v15, %v591_v1  ;;  %v548_v8 = vld [vmem:[%s1011_s0 + $0x50] sm:$0xff]  }
   0x6   :  { %v213_v20 = vadd.f32 %v605_v7, %v144_v12  ;;  %v214_v21 = vadd.f32 %v605_v7, %v145_v13  ;;  %v215_v24 = vadd.f32 %v605_v7, %v146_v16  ;;  %v216_v25 = vadd.f32 %v605_v7, %v147_v17  ;;  %v549_v13 = vld [vmem:[%s1011_s0 + $0x58] sm:$0xff]  }
   0x7   :  { %v217_v26 = vadd.f32 %v605_v7, %v148_v18  ;;  %v218_v27 = vadd.f32 %v605_v7, %v149_v19  ;;  %v219_v31 = vadd.f32 %v605_v7, %v150_v22  ;;  %v220_v32 = vadd.f32 %v605_v7, %v151_v23 }
   0x8   :  { %v277_v29 = vmax.f32 %v213_v20, 0.0  ;;  %v278_v30 = vmax.f32 %v214_v21, 0.0  ;;  %v279_v35 = vmax.f32 %v215_v24, 0.0  ;;  %v280_v36 = vmax.f32 %v216_v25, 0.0 }
   0x9   :  { %v281_v37 = vmax.f32 %v217_v26, 0.0  ;;  %v282_v38 = vmax.f32 %v218_v27, 0.0  ;;  %v283_v40 = vmax.f32 %v219_v31, 0.0  ;;  %v284_v41 = vmax.f32 %v220_v32, 0.0 }
   0xa   :  { %341 = vst [vmem:[%s1013_s2] sm:$0xff] %v277_v29  ;;  %342 = vst [vmem:[%s1013_s2 + $0x8] sm:$0xff] %v278_v30  ;;  %v429_v42 = vunpack.c.l.bf16 %v542_v28  ;;  %v430_v43 = vunpack.c.h.bf16 %v542_v28  ;;  %v433_v44 = vunpack.c.l.bf16 %v543_v33  ;;  %v434_v45 = vunpack.c.h.bf16 %v543_v33 }
   0xb   :  { %343 = vst [vmem:[%s1013_s2 + $0x10] sm:$0xff] %v279_v35  ;;  %344 = vst [vmem:[%s1013_s2 + $0x18] sm:$0xff] %v280_v36  ;;  %v437_v46 = vunpack.c.l.bf16 %v544_v34  ;;  %v438_v47 = vunpack.c.h.bf16 %v544_v34  ;;  %v441_v50 = vunpack.c.l.bf16 %v545_v39  ;;  %v442_v51 = vunpack.c.h.bf16 %v545_v39 }
   0xc   :  { %345 = vst [vmem:[%s1013_s2 + $0x20] sm:$0xff] %v281_v37  ;;  %346 = vst [vmem:[%s1013_s2 + $0x28] sm:$0xff] %v282_v38  ;;  %v152_v48 = vmul.f32 %v429_v42, %v591_v1  ;;  %v153_v49 = vmul.f32 %v430_v43, %v591_v1  ;;  %v154_v52 = vmul.f32 %v433_v44, %v591_v1  ;;  %v445_v16 = vunpack.c.l.bf16 %v546_v0  ;;  %v550_v38 = vld [vmem:[%s1011_s0 + $0x60] sm:$0xff]   ;;  %v551_v43 = vld [vmem:[%s1011_s0 + $0x68] sm:$0xff]  }
   0xd   :  { %347 = vst [vmem:[%s1013_s2 + $0x30] sm:$0xff] %v283_v40  ;;  %348 = vst [vmem:[%s1013_s2 + $0x38] sm:$0xff] %v284_v41  ;;  %v155_v53 = vmul.f32 %v434_v45, %v591_v1  ;;  %v156_v54 = vmul.f32 %v437_v46, %v591_v1  ;;  %v157_v55 = vmul.f32 %v438_v47, %v591_v1  ;;  %v446_v17 = vunpack.c.h.bf16 %v546_v0  ;;  %v552_v44 = vld [vmem:[%s1011_s0 + $0x70] sm:$0xff]  }
   0xe   :  { %v221_v56 = vadd.f32 %v605_v7, %v152_v48  ;;  %v222_v57 = vadd.f32 %v605_v7, %v153_v49  ;;  %v158_v58 = vmul.f32 %v441_v50, %v591_v1  ;;  %v159_v59 = vmul.f32 %v442_v51, %v591_v1  ;;  %v553_v49 = vld [vmem:[%s1011_s0 + $0x78] sm:$0xff]  }
   0xf   :  { %v223_v60 = vadd.f32 %v605_v7, %v154_v52  ;;  %v224_v61 = vadd.f32 %v605_v7, %v155_v53  ;;  %v225_v62 = vadd.f32 %v605_v7, %v156_v54  ;;  %v226_v63 = vadd.f32 %v605_v7, %v157_v55 }
  0x10   :  { %v285_v2 = vmax.f32 %v221_v56, 0.0  ;;  %v286_v3 = vmax.f32 %v222_v57, 0.0  ;;  %v227_v4 = vadd.f32 %v605_v7, %v158_v58  ;;  %v228_v5 = vadd.f32 %v605_v7, %v159_v59 }
  0x11   :  { %v287_v9 = vmax.f32 %v223_v60, 0.0  ;;  %v288_v10 = vmax.f32 %v224_v61, 0.0  ;;  %v289_v11 = vmax.f32 %v225_v62, 0.0  ;;  %v290_v12 = vmax.f32 %v226_v63, 0.0 }
  0x12   :  { %349 = vst [vmem:[%s1013_s2 + $0x40] sm:$0xff] %v285_v2  ;;  %350 = vst [vmem:[%s1013_s2 + $0x48] sm:$0xff] %v286_v3  ;;  %v291_v14 = vmax.f32 %v227_v4, 0.0  ;;  %v292_v15 = vmax.f32 %v228_v5, 0.0  ;;  %v449_v18 = vunpack.c.l.bf16 %v547_v6  ;;  %v450_v19 = vunpack.c.h.bf16 %v547_v6 }
  0x13   :  { %351 = vst [vmem:[%s1013_s2 + $0x50] sm:$0xff] %v287_v9  ;;  %352 = vst [vmem:[%s1013_s2 + $0x58] sm:$0xff] %v288_v10  ;;  %v453_v20 = vunpack.c.l.bf16 %v548_v8  ;;  %v454_v21 = vunpack.c.h.bf16 %v548_v8  ;;  %v160_v22 = vmul.f32 %v445_v16, %v591_v1  ;;  %v161_v23 = vmul.f32 %v446_v17, %v591_v1  ;;  %v555_v17 = vld [vmem:[%s1011_s0 + $0x88] sm:$0xff]  }
  0x14   :  { %353 = vst [vmem:[%s1013_s2 + $0x60] sm:$0xff] %v289_v11  ;;  %354 = vst [vmem:[%s1013_s2 + $0x68] sm:$0xff] %v290_v12  ;;  %v457_v24 = vunpack.c.l.bf16 %v549_v13  ;;  %v458_v25 = vunpack.c.h.bf16 %v549_v13  ;;  %v162_v26 = vmul.f32 %v449_v18, %v591_v1  ;;  %v163_v27 = vmul.f32 %v450_v19, %v591_v1  ;;  %v554_v12 = vld [vmem:[%s1011_s0 + $0x80] sm:$0xff]   ;;  %v556_v18 = vld [vmem:[%s1011_s0 + $0x90] sm:$0xff]  }
  0x15   :  { %355 = vst [vmem:[%s1013_s2 + $0x70] sm:$0xff] %v291_v14  ;;  %356 = vst [vmem:[%s1013_s2 + $0x78] sm:$0xff] %v292_v15  ;;  %v164_v28 = vmul.f32 %v453_v20, %v591_v1  ;;  %v165_v29 = vmul.f32 %v454_v21, %v591_v1  ;;  %v229_v30 = vadd.f32 %v605_v7, %v160_v22  ;;  %v461_v52 = vunpack.c.l.bf16 %v550_v38 }
  0x16   :  { %v230_v31 = vadd.f32 %v605_v7, %v161_v23  ;;  %v166_v32 = vmul.f32 %v457_v24, %v591_v1  ;;  %v167_v33 = vmul.f32 %v458_v25, %v591_v1  ;;  %v231_v34 = vadd.f32 %v605_v7, %v162_v26  ;;  %v557_v23 = vld [vmem:[%s1011_s0 + $0x98] sm:$0xff]  }
  0x17   :  { %v232_v35 = vadd.f32 %v605_v7, %v163_v27  ;;  %v233_v36 = vadd.f32 %v605_v7, %v164_v28  ;;  %v234_v37 = vadd.f32 %v605_v7, %v165_v29  ;;  %v293_v39 = vmax.f32 %v229_v30, 0.0 }
  0x18   :  { %v294_v40 = vmax.f32 %v230_v31, 0.0  ;;  %v235_v41 = vadd.f32 %v605_v7, %v166_v32  ;;  %v236_v42 = vadd.f32 %v605_v7, %v167_v33  ;;  %v295_v45 = vmax.f32 %v231_v34, 0.0 }
  0x19   :  { %v296_v46 = vmax.f32 %v232_v35, 0.0  ;;  %v297_v47 = vmax.f32 %v233_v36, 0.0  ;;  %v298_v48 = vmax.f32 %v234_v37, 0.0  ;;  %357 = vst [vmem:[%s1013_s2 + $0x80] sm:$0xff] %v293_v39  ;;  %v462_v53 = vunpack.c.h.bf16 %v550_v38 }
  0x1a   :  { %358 = vst [vmem:[%s1013_s2 + $0x88] sm:$0xff] %v294_v40  ;;  %v299_v50 = vmax.f32 %v235_v41, 0.0  ;;  %v300_v51 = vmax.f32 %v236_v42, 0.0  ;;  %359 = vst [vmem:[%s1013_s2 + $0x90] sm:$0xff] %v295_v45  ;;  %v465_v54 = vunpack.c.l.bf16 %v551_v43  ;;  %v466_v55 = vunpack.c.h.bf16 %v551_v43 }
  0x1b   :  { %360 = vst [vmem:[%s1013_s2 + $0x98] sm:$0xff] %v296_v46  ;;  %361 = vst [vmem:[%s1013_s2 + $0xa0] sm:$0xff] %v297_v47  ;;  %v469_v56 = vunpack.c.l.bf16 %v552_v44  ;;  %v470_v57 = vunpack.c.h.bf16 %v552_v44  ;;  %v168_v58 = vmul.f32 %v461_v52, %v591_v1  ;;  %v169_v59 = vmul.f32 %v462_v53, %v591_v1  ;;  %v559_v53 = vld [vmem:[%s1011_s0 + $0xa8] sm:$0xff]  }
  0x1c   :  { %362 = vst [vmem:[%s1013_s2 + $0xa8] sm:$0xff] %v298_v48  ;;  %363 = vst [vmem:[%s1013_s2 + $0xb0] sm:$0xff] %v299_v50  ;;  %v473_v60 = vunpack.c.l.bf16 %v553_v49  ;;  %v474_v61 = vunpack.c.h.bf16 %v553_v49  ;;  %v170_v62 = vmul.f32 %v465_v54, %v591_v1  ;;  %v171_v63 = vmul.f32 %v466_v55, %v591_v1  ;;  %v558_v48 = vld [vmem:[%s1011_s0 + $0xa0] sm:$0xff]   ;;  %v560_v54 = vld [vmem:[%s1011_s0 + $0xb0] sm:$0xff]  }
  0x1d   :  { %364 = vst [vmem:[%s1013_s2 + $0xb8] sm:$0xff] %v300_v51  ;;  %v172_v0 = vmul.f32 %v469_v56, %v591_v1  ;;  %v173_v2 = vmul.f32 %v470_v57, %v591_v1  ;;  %v237_v3 = vadd.f32 %v605_v7, %v168_v58  ;;  %v238_v4 = vadd.f32 %v605_v7, %v169_v59  ;;  %v561_v59 = vld [vmem:[%s1011_s0 + $0xb8] sm:$0xff]  }
  0x1e   :  { %v174_v5 = vmul.f32 %v473_v60, %v591_v1  ;;  %v175_v6 = vmul.f32 %v474_v61, %v591_v1  ;;  %v239_v8 = vadd.f32 %v605_v7, %v170_v62  ;;  %v240_v9 = vadd.f32 %v605_v7, %v171_v63 }
  0x1f   :  { %v241_v10 = vadd.f32 %v605_v7, %v172_v0  ;;  %v242_v11 = vadd.f32 %v605_v7, %v173_v2  ;;  %v301_v13 = vmax.f32 %v237_v3, 0.0  ;;  %v302_v14 = vmax.f32 %v238_v4, 0.0 }
  0x20   :  { %v243_v15 = vadd.f32 %v605_v7, %v174_v5  ;;  %v244_v16 = vadd.f32 %v605_v7, %v175_v6  ;;  %v303_v19 = vmax.f32 %v239_v8, 0.0  ;;  %v304_v20 = vmax.f32 %v240_v9, 0.0 }
  0x21   :  { %v305_v21 = vmax.f32 %v241_v10, 0.0  ;;  %v306_v22 = vmax.f32 %v242_v11, 0.0  ;;  %365 = vst [vmem:[%s1013_s2 + $0xc0] sm:$0xff] %v301_v13  ;;  %366 = vst [vmem:[%s1013_s2 + $0xc8] sm:$0xff] %v302_v14  ;;  %v477_v26 = vunpack.c.l.bf16 %v554_v12  ;;  %v478_v27 = vunpack.c.h.bf16 %v554_v12 }
  0x22   :  { %v307_v24 = vmax.f32 %v243_v15, 0.0  ;;  %v308_v25 = vmax.f32 %v244_v16, 0.0  ;;  %367 = vst [vmem:[%s1013_s2 + $0xd0] sm:$0xff] %v303_v19  ;;  %368 = vst [vmem:[%s1013_s2 + $0xd8] sm:$0xff] %v304_v20  ;;  %v481_v28 = vunpack.c.l.bf16 %v555_v17  ;;  %v482_v29 = vunpack.c.h.bf16 %v555_v17 }
  0x23   :  { %369 = vst [vmem:[%s1013_s2 + $0xe0] sm:$0xff] %v305_v21  ;;  %370 = vst [vmem:[%s1013_s2 + $0xe8] sm:$0xff] %v306_v22  ;;  %v485_v30 = vunpack.c.l.bf16 %v556_v18  ;;  %v486_v31 = vunpack.c.h.bf16 %v556_v18  ;;  %v176_v32 = vmul.f32 %v477_v26, %v591_v1  ;;  %v177_v33 = vmul.f32 %v478_v27, %v591_v1  ;;  %v562_v22 = vld [vmem:[%s1011_s0 + $0xc0] sm:$0xff]   ;;  %v563_v27 = vld [vmem:[%s1011_s0 + $0xc8] sm:$0xff]  }
  0x24   :  { %371 = vst [vmem:[%s1013_s2 + $0xf0] sm:$0xff] %v307_v24  ;;  %372 = vst [vmem:[%s1013_s2 + $0xf8] sm:$0xff] %v308_v25  ;;  %v489_v34 = vunpack.c.l.bf16 %v557_v23  ;;  %v490_v35 = vunpack.c.h.bf16 %v557_v23  ;;  %v178_v36 = vmul.f32 %v481_v28, %v591_v1  ;;  %v179_v37 = vmul.f32 %v482_v29, %v591_v1  ;;  %v564_v28 = vld [vmem:[%s1011_s0 + $0xd0] sm:$0xff]  }
  0x25   :  { %v180_v38 = vmul.f32 %v485_v30, %v591_v1  ;;  %v181_v39 = vmul.f32 %v486_v31, %v591_v1  ;;  %v245_v40 = vadd.f32 %v605_v7, %v176_v32  ;;  %v246_v41 = vadd.f32 %v605_v7, %v177_v33  ;;  %v565_v33 = vld [vmem:[%s1011_s0 + $0xd8] sm:$0xff]  }
  0x26   :  { %v182_v42 = vmul.f32 %v489_v34, %v591_v1  ;;  %v183_v43 = vmul.f32 %v490_v35, %v591_v1  ;;  %v247_v44 = vadd.f32 %v605_v7, %v178_v36  ;;  %v248_v45 = vadd.f32 %v605_v7, %v179_v37 }
  0x27   :  { %v249_v46 = vadd.f32 %v605_v7, %v180_v38  ;;  %v250_v47 = vadd.f32 %v605_v7, %v181_v39  ;;  %v309_v49 = vmax.f32 %v245_v40, 0.0  ;;  %v310_v50 = vmax.f32 %v246_v41, 0.0 }
  0x28   :  { %v251_v51 = vadd.f32 %v605_v7, %v182_v42  ;;  %v252_v52 = vadd.f32 %v605_v7, %v183_v43  ;;  %v311_v55 = vmax.f32 %v247_v44, 0.0  ;;  %v312_v56 = vmax.f32 %v248_v45, 0.0 }
  0x29   :  { %v313_v57 = vmax.f32 %v249_v46, 0.0  ;;  %v314_v58 = vmax.f32 %v250_v47, 0.0  ;;  %373 = vst [vmem:[%s1013_s2 + $0x100] sm:$0xff] %v309_v49  ;;  %374 = vst [vmem:[%s1013_s2 + $0x108] sm:$0xff] %v310_v50  ;;  %v493_v62 = vunpack.c.l.bf16 %v558_v48  ;;  %v494_v63 = vunpack.c.h.bf16 %v558_v48 }
  0x2a   :  { %v315_v60 = vmax.f32 %v251_v51, 0.0  ;;  %v316_v61 = vmax.f32 %v252_v52, 0.0  ;;  %375 = vst [vmem:[%s1013_s2 + $0x110] sm:$0xff] %v311_v55  ;;  %376 = vst [vmem:[%s1013_s2 + $0x118] sm:$0xff] %v312_v56  ;;  %v497_v0 = vunpack.c.l.bf16 %v559_v53  ;;  %v498_v2 = vunpack.c.h.bf16 %v559_v53 }
  0x2b   :  { %377 = vst [vmem:[%s1013_s2 + $0x120] sm:$0xff] %v313_v57  ;;  %378 = vst [vmem:[%s1013_s2 + $0x128] sm:$0xff] %v314_v58  ;;  %v501_v3 = vunpack.c.l.bf16 %v560_v54  ;;  %v502_v4 = vunpack.c.h.bf16 %v560_v54  ;;  %v184_v5 = vmul.f32 %v493_v62, %v591_v1  ;;  %v185_v6 = vmul.f32 %v494_v63, %v591_v1  ;;  %v566_v58 = vld [vmem:[%s1011_s0 + $0xe0] sm:$0xff]   ;;  %v567_v63 = vld [vmem:[%s1011_s0 + $0xe8] sm:$0xff]  }
  0x2c   :  { %379 = vst [vmem:[%s1013_s2 + $0x130] sm:$0xff] %v315_v60  ;;  %380 = vst [vmem:[%s1013_s2 + $0x138] sm:$0xff] %v316_v61  ;;  %v505_v8 = vunpack.c.l.bf16 %v561_v59  ;;  %v506_v9 = vunpack.c.h.bf16 %v561_v59  ;;  %v186_v10 = vmul.f32 %v497_v0, %v591_v1  ;;  %v187_v11 = vmul.f32 %v498_v2, %v591_v1  ;;  %v568_v0 = vld [vmem:[%s1011_s0 + $0xf0] sm:$0xff]  }
  0x2d   :  { %v188_v12 = vmul.f32 %v501_v3, %v591_v1  ;;  %v189_v13 = vmul.f32 %v502_v4, %v591_v1  ;;  %v253_v14 = vadd.f32 %v605_v7, %v184_v5  ;;  %v254_v15 = vadd.f32 %v605_v7, %v185_v6  ;;  %v569_v6 = vld [vmem:[%s1011_s0 + $0xf8] sm:$0xff]  }
  0x2e   :  { %v190_v16 = vmul.f32 %v505_v8, %v591_v1  ;;  %v191_v17 = vmul.f32 %v506_v9, %v591_v1  ;;  %v255_v18 = vadd.f32 %v605_v7, %v186_v10  ;;  %v256_v19 = vadd.f32 %v605_v7, %v187_v11 }
  0x2f   :  { %v257_v20 = vadd.f32 %v605_v7, %v188_v12  ;;  %v258_v21 = vadd.f32 %v605_v7, %v189_v13  ;;  %v317_v23 = vmax.f32 %v253_v14, 0.0  ;;  %v318_v24 = vmax.f32 %v254_v15, 0.0 }
  0x30   :  { %v259_v25 = vadd.f32 %v605_v7, %v190_v16  ;;  %v260_v26 = vadd.f32 %v605_v7, %v191_v17  ;;  %v319_v29 = vmax.f32 %v255_v18, 0.0  ;;  %v320_v30 = vmax.f32 %v256_v19, 0.0 }
  0x31   :  { %v321_v31 = vmax.f32 %v257_v20, 0.0  ;;  %v322_v32 = vmax.f32 %v258_v21, 0.0  ;;  %381 = vst [vmem:[%s1013_s2 + $0x140] sm:$0xff] %v317_v23  ;;  %382 = vst [vmem:[%s1013_s2 + $0x148] sm:$0xff] %v318_v24  ;;  %v509_v36 = vunpack.c.l.bf16 %v562_v22  ;;  %v510_v37 = vunpack.c.h.bf16 %v562_v22 }
  0x32   :  { %v323_v34 = vmax.f32 %v259_v25, 0.0  ;;  %v324_v35 = vmax.f32 %v260_v26, 0.0  ;;  %383 = vst [vmem:[%s1013_s2 + $0x150] sm:$0xff] %v319_v29  ;;  %384 = vst [vmem:[%s1013_s2 + $0x158] sm:$0xff] %v320_v30  ;;  %v513_v38 = vunpack.c.l.bf16 %v563_v27  ;;  %v514_v39 = vunpack.c.h.bf16 %v563_v27 }
  0x33   :  { %385 = vst [vmem:[%s1013_s2 + $0x160] sm:$0xff] %v321_v31  ;;  %386 = vst [vmem:[%s1013_s2 + $0x168] sm:$0xff] %v322_v32  ;;  %v517_v40 = vunpack.c.l.bf16 %v564_v28  ;;  %v518_v41 = vunpack.c.h.bf16 %v564_v28  ;;  %v192_v42 = vmul.f32 %v509_v36, %v591_v1  ;;  %v193_v43 = vmul.f32 %v510_v37, %v591_v1 }
  0x34   :  { %387 = vst [vmem:[%s1013_s2 + $0x170] sm:$0xff] %v323_v34  ;;  %388 = vst [vmem:[%s1013_s2 + $0x178] sm:$0xff] %v324_v35  ;;  %v521_v44 = vunpack.c.l.bf16 %v565_v33  ;;  %v522_v45 = vunpack.c.h.bf16 %v565_v33  ;;  %v194_v46 = vmul.f32 %v513_v38, %v591_v1  ;;  %v195_v47 = vmul.f32 %v514_v39, %v591_v1 }
  0x35   :  { %v196_v48 = vmul.f32 %v517_v40, %v591_v1  ;;  %v197_v49 = vmul.f32 %v518_v41, %v591_v1  ;;  %v261_v50 = vadd.f32 %v605_v7, %v192_v42  ;;  %v262_v51 = vadd.f32 %v605_v7, %v193_v43 }
  0x36   :  { %v198_v52 = vmul.f32 %v521_v44, %v591_v1  ;;  %v199_v53 = vmul.f32 %v522_v45, %v591_v1  ;;  %v263_v54 = vadd.f32 %v605_v7, %v194_v46  ;;  %v264_v55 = vadd.f32 %v605_v7, %v195_v47 }
  0x37   :  { %v265_v56 = vadd.f32 %v605_v7, %v196_v48  ;;  %v266_v57 = vadd.f32 %v605_v7, %v197_v49  ;;  %v325_v59 = vmax.f32 %v261_v50, 0.0  ;;  %v326_v60 = vmax.f32 %v262_v51, 0.0 }
  0x38   :  { %v267_v61 = vadd.f32 %v605_v7, %v198_v52  ;;  %v268_v62 = vadd.f32 %v605_v7, %v199_v53  ;;  %v327_v2 = vmax.f32 %v263_v54, 0.0  ;;  %v328_v3 = vmax.f32 %v264_v55, 0.0 }
  0x39   :  { %v329_v4 = vmax.f32 %v265_v56, 0.0  ;;  %v330_v5 = vmax.f32 %v266_v57, 0.0  ;;  %389 = vst [vmem:[%s1013_s2 + $0x180] sm:$0xff] %v325_v59  ;;  %390 = vst [vmem:[%s1013_s2 + $0x188] sm:$0xff] %v326_v60  ;;  %v525_v10 = vunpack.c.l.bf16 %v566_v58  ;;  %v526_v11 = vunpack.c.h.bf16 %v566_v58 }
  0x3a   :  { %v331_v8 = vmax.f32 %v267_v61, 0.0  ;;  %v332_v9 = vmax.f32 %v268_v62, 0.0  ;;  %391 = vst [vmem:[%s1013_s2 + $0x190] sm:$0xff] %v327_v2  ;;  %392 = vst [vmem:[%s1013_s2 + $0x198] sm:$0xff] %v328_v3  ;;  %v529_v12 = vunpack.c.l.bf16 %v567_v63  ;;  %v530_v13 = vunpack.c.h.bf16 %v567_v63 }
  0x3b   :  { %393 = vst [vmem:[%s1013_s2 + $0x1a0] sm:$0xff] %v329_v4  ;;  %394 = vst [vmem:[%s1013_s2 + $0x1a8] sm:$0xff] %v330_v5  ;;  %v533_v14 = vunpack.c.l.bf16 %v568_v0  ;;  %v534_v15 = vunpack.c.h.bf16 %v568_v0  ;;  %v200_v16 = vmul.f32 %v525_v10, %v591_v1  ;;  %v201_v17 = vmul.f32 %v526_v11, %v591_v1 }
  0x3c   :  { %395 = vst [vmem:[%s1013_s2 + $0x1b0] sm:$0xff] %v331_v8  ;;  %396 = vst [vmem:[%s1013_s2 + $0x1b8] sm:$0xff] %v332_v9  ;;  %v537_v18 = vunpack.c.l.bf16 %v569_v6  ;;  %v538_v19 = vunpack.c.h.bf16 %v569_v6  ;;  %v202_v20 = vmul.f32 %v529_v12, %v591_v1  ;;  %v203_v21 = vmul.f32 %v530_v13, %v591_v1 }
  0x3d   :  { %v204_v22 = vmul.f32 %v533_v14, %v591_v1  ;;  %v205_v23 = vmul.f32 %v534_v15, %v591_v1  ;;  %v269_v24 = vadd.f32 %v605_v7, %v200_v16  ;;  %v270_v25 = vadd.f32 %v605_v7, %v201_v17 }
  0x3e   :  { %v206_v26 = vmul.f32 %v537_v18, %v591_v1  ;;  %v207_v27 = vmul.f32 %v538_v19, %v591_v1  ;;  %v271_v28 = vadd.f32 %v605_v7, %v202_v20  ;;  %v272_v29 = vadd.f32 %v605_v7, %v203_v21 }
  0x3f   :  { %v273_v30 = vadd.f32 %v605_v7, %v204_v22  ;;  %v274_v31 = vadd.f32 %v605_v7, %v205_v23  ;;  %v333_v32 = vmax.f32 %v269_v24, 0.0  ;;  %v334_v33 = vmax.f32 %v270_v25, 0.0 }
  0x40   :  { %v275_v34 = vadd.f32 %v605_v7, %v206_v26  ;;  %v276_v35 = vadd.f32 %v605_v7, %v207_v27  ;;  %v335_v36 = vmax.f32 %v271_v28, 0.0  ;;  %v336_v37 = vmax.f32 %v272_v29, 0.0 }
  0x41   :  { %v337_v38 = vmax.f32 %v273_v30, 0.0  ;;  %v338_v39 = vmax.f32 %v274_v31, 0.0  ;;  %397 = vst [vmem:[%s1013_s2 + $0x1c0] sm:$0xff] %v333_v32  ;;  %398 = vst [vmem:[%s1013_s2 + $0x1c8] sm:$0xff] %v334_v33 }
  0x42   :  { %v339_v1 = vmax.f32 %v275_v34, 0.0  ;;  %v340_v40 = vmax.f32 %v276_v35, 0.0  ;;  %399 = vst [vmem:[%s1013_s2 + $0x1d0] sm:$0xff] %v335_v36  ;;  %400 = vst [vmem:[%s1013_s2 + $0x1d8] sm:$0xff] %v336_v37 }
  0x43   :  { %401 = vst [vmem:[%s1013_s2 + $0x1e0] sm:$0xff] %v337_v38  ;;  %402 = vst [vmem:[%s1013_s2 + $0x1e8] sm:$0xff] %v338_v39 }
  0x44   :  { %403 = vst [vmem:[%s1013_s2 + $0x1f0] sm:$0xff] %v339_v1  ;;  %404 = vst [vmem:[%s1013_s2 + $0x1f8] sm:$0xff] %v340_v40 }

// kernel: basic_conv2d.2
= control target key start
LH: loop header
LB: loop body
LE: loop exit
PB: predicated region body
PF: predicated region fallthrough
CT: control target
= control target key end

     0   :  { %vm1536_vm0 = vcmask 1040384   ;;  %s2513_s1 = inlined_call_operand.vmem [shape: bf16[128,128], index: 1, kind: input, shape index: {}]   ;;  %s2514_s0 = inlined_call_operand.vmem [shape: bf16[512,128], index: 0, kind: input, shape index: {}]   ;;  %s2515_s2 = inlined_call_operand.vmem [shape: bf16[512,128], index: 2, kind: output, shape index: {0}]   ;;  %s2516_s3 = inlined_call_operand.vmem [shape: f32[1,2,128], index: 3, kind: output, shape index: {1}]  }
   0x1   :  { %v2042_v0 = vld [vmem:[%s2513_s1] sm:$0xff]   ;;  %v2043_v1 = vld [vmem:[%s2513_s1 + $0x8] sm:$0xff]   ;;  %v2044_v2 = vld [vmem:[%s2513_s1 + $0x10] sm:$0xff]  }
   0x2   :  { %1946 = vmatprep.subr.bf16.mxu0 %v2042_v0  ;;  %2026 = vmatprep.subr.bf16.mxu1 %v2042_v0  ;;  %v2045_v3 = vld [vmem:[%s2513_s1 + $0x18] sm:$0xff]   ;;  %v2050_v4 = vld [vmem:[%s2514_s0] sm:$0xff]   ;;  %v2047_v6 = vld [vmem:[%s2513_s1 + $0x28] sm:$0xff]  }
   0x3   :  { %1947 = vmatpush3.bf16.msra.mxu0 %v2042_v0  ;;  %2034 = vmatpush3.bf16.msra.mxu1 %v2042_v0  ;;  %v2046_v5 = vld [vmem:[%s2513_s1 + $0x20] sm:$0xff]   ;;  %v2048_v7 = vld [vmem:[%s2513_s1 + $0x30] sm:$0xff]   ;;  %v2049_v8 = vld [vmem:[%s2513_s1 + $0x38] sm:$0xff]  }
   0x4   :  { %1948 = vmatprep.subr.bf16.mxu0 %v2043_v1  ;;  %2027 = vmatprep.subr.bf16.mxu1 %v2043_v1  ;;  %v2066_v9 = vld [vmem:[%s2514_s0 + $0x80] sm:$0xff]   ;;  %v2051_v10 = vld [vmem:[%s2514_s0 + $0x8] sm:$0xff]   ;;  %v2052_v11 = vld [vmem:[%s2514_s0 + $0x10] sm:$0xff]  }
   0x5   :  { %1962 = vmatprep.mubr.bf16.mxu0 %v2050_v4  ;;  %1994 = vmatprep.mubr.bf16.mxu1 %v2066_v9  ;;  %v2067_v12 = vld [vmem:[%s2514_s0 + $0x88] sm:$0xff]   ;;  %v2068_v13 = vld [vmem:[%s2514_s0 + $0x90] sm:$0xff]   ;;  %v2053_v14 = vld [vmem:[%s2514_s0 + $0x18] sm:$0xff]  }
   0x6   :  { %v2054_v15 = vld [vmem:[%s2514_s0 + $0x20] sm:$0xff]   ;;  %v2069_v16 = vld [vmem:[%s2514_s0 + $0x98] sm:$0xff]   ;;  %v2055_v18 = vld [vmem:[%s2514_s0 + $0x28] sm:$0xff]  }
   0x7   :  { %1949 = vmatpush3.bf16.msra.mxu0 %v2043_v1  ;;  %2035 = vmatpush3.bf16.msra.mxu1 %v2043_v1  ;;  %v2070_v17 = vld [vmem:[%s2514_s0 + $0xa0] sm:$0xff]   ;;  %v2071_v19 = vld [vmem:[%s2514_s0 + $0xa8] sm:$0xff]   ;;  %v2056_v20 = vld [vmem:[%s2514_s0 + $0x30] sm:$0xff]  }
   0x8   :  { %1950 = vmatprep.subr.bf16.mxu0 %v2044_v2  ;;  %2028 = vmatprep.subr.bf16.mxu1 %v2044_v2  ;;  %v2072_v21 = vld [vmem:[%s2514_s0 + $0xb0] sm:$0xff]   ;;  %v2057_v22 = vld [vmem:[%s2514_s0 + $0x38] sm:$0xff]   ;;  %v2058_v24 = vld [vmem:[%s2514_s0 + $0x40] sm:$0xff]  }
   0x9   :  { %v2073_v23 = vld [vmem:[%s2514_s0 + $0xb8] sm:$0xff]   ;;  %v2074_v25 = vld [vmem:[%s2514_s0 + $0xc0] sm:$0xff]   ;;  %v2059_v26 = vld [vmem:[%s2514_s0 + $0x48] sm:$0xff]  }
   0xa   :  { %v2075_v27 = vld [vmem:[%s2514_s0 + $0xc8] sm:$0xff]   ;;  %v2060_v28 = vld [vmem:[%s2514_s0 + $0x50] sm:$0xff]   ;;  %v2061_v30 = vld [vmem:[%s2514_s0 + $0x58] sm:$0xff]  }
   0xb   :  { %1951 = vmatpush3.bf16.msra.mxu0 %v2044_v2  ;;  %2036 = vmatpush3.bf16.msra.mxu1 %v2044_v2  ;;  %v2076_v29 = vld [vmem:[%s2514_s0 + $0xd0] sm:$0xff]   ;;  %v2077_v31 = vld [vmem:[%s2514_s0 + $0xd8] sm:$0xff]   ;;  %v2062_v32 = vld [vmem:[%s2514_s0 + $0x60] sm:$0xff]  }
   0xc   :  { %1952 = vmatprep.subr.bf16.mxu0 %v2045_v3  ;;  %2029 = vmatprep.subr.bf16.mxu1 %v2045_v3  ;;  %v2078_v33 = vld [vmem:[%s2514_s0 + $0xe0] sm:$0xff]   ;;  %v2063_v34 = vld [vmem:[%s2514_s0 + $0x68] sm:$0xff]   ;;  %v2064_v36 = vld [vmem:[%s2514_s0 + $0x70] sm:$0xff]  }
   0xd   :  { %v2079_v35 = vld [vmem:[%s2514_s0 + $0xe8] sm:$0xff]   ;;  %v2080_v37 = vld [vmem:[%s2514_s0 + $0xf0] sm:$0xff]   ;;  %v2065_v38 = vld [vmem:[%s2514_s0 + $0x78] sm:$0xff]  }
   0xe   :  { %v2081_v39 = vld [vmem:[%s2514_s0 + $0xf8] sm:$0xff]  }
   0xf   :  { %1953 = vmatpush3.bf16.msra.mxu0 %v2045_v3  ;;  %2037 = vmatpush3.bf16.msra.mxu1 %v2045_v3 }
  0x10   :  { %1954 = vmatprep.subr.bf16.mxu0 %v2046_v5  ;;  %2030 = vmatprep.subr.bf16.mxu1 %v2046_v5 }
  0x13   :  { %1955 = vmatpush3.bf16.msra.mxu0 %v2046_v5  ;;  %2038 = vmatpush3.bf16.msra.mxu1 %v2046_v5 }
  0x14   :  { %1956 = vmatprep.subr.bf16.mxu0 %v2047_v6  ;;  %2031 = vmatprep.subr.bf16.mxu1 %v2047_v6 }
  0x17   :  { %1957 = vmatpush3.bf16.msra.mxu0 %v2047_v6  ;;  %2039 = vmatpush3.bf16.msra.mxu1 %v2047_v6 }
  0x18   :  { %1958 = vmatprep.subr.bf16.mxu0 %v2048_v7  ;;  %2032 = vmatprep.subr.bf16.mxu1 %v2048_v7 }
  0x1b   :  { %1959 = vmatpush3.bf16.msra.mxu0 %v2048_v7  ;;  %2040 = vmatpush3.bf16.msra.mxu1 %v2048_v7 }
  0x1c   :  { %1960 = vmatprep.subr.bf16.mxu0 %v2049_v8  ;;  %2033 = vmatprep.subr.bf16.mxu1 %v2049_v8 }
  0x1f   :  { %1961 = vmatpush3.bf16.msra.mxu0 %v2049_v8  ;;  %2041 = vmatpush3.bf16.msra.mxu1 %v2049_v8 }
  0x22   :  { %1963 = vmatmul.mubr.bf16.vlgmr.msra.gmra.mrb[0].mxu0 %v2051_v10  ;;  %1995 = vmatmul.mubr.bf16.vlgmr.msra.gmra.mrb[0].mxu1 %v2067_v12 }
  0x23   :  { %1966 = vmatprep.mubr.bf16.mxu0 %v2052_v11  ;;  %1998 = vmatprep.mubr.bf16.mxu1 %v2068_v13 }
  0x2a   :  { %1967 = vmatmul.mubr.bf16.gmra.mrb[4].mxu0 %v2053_v14  ;;  %1999 = vmatmul.mubr.bf16.gmra.mrb[4].mxu1 %v2069_v16 }
  0x2b   :  { %1970 = vmatprep.mubr.bf16.mxu0 %v2054_v15  ;;  %2002 = vmatprep.mubr.bf16.mxu1 %v2070_v17 }
  0x32   :  { %1971 = vmatmul.mubr.bf16.gmra.mrb[8].mxu0 %v2055_v18  ;;  %2003 = vmatmul.mubr.bf16.gmra.mrb[8].mxu1 %v2071_v19 }
  0x33   :  { %1974 = vmatprep.mubr.bf16.mxu0 %v2056_v20  ;;  %2006 = vmatprep.mubr.bf16.mxu1 %v2072_v21 }
  0x3a   :  { %1975 = vmatmul.mubr.bf16.gmra.mrb[12].mxu0 %v2057_v22  ;;  %2007 = vmatmul.mubr.bf16.gmra.mrb[12].mxu1 %v2073_v23 }
  0x3b   :  { %1978 = vmatprep.mubr.bf16.mxu0 %v2058_v24  ;;  %2010 = vmatprep.mubr.bf16.mxu1 %v2074_v25 }
  0x42   :  { %1979 = vmatmul.mubr.bf16.gmra.mrb[16].mxu0 %v2059_v26  ;;  %2011 = vmatmul.mubr.bf16.gmra.mrb[16].mxu1 %v2075_v27 }
  0x43   :  { %1982 = vmatprep.mubr.bf16.mxu0 %v2060_v28  ;;  %2014 = vmatprep.mubr.bf16.mxu1 %v2076_v29 }
  0x4a   :  { %1983 = vmatmul.mubr.bf16.gmra.mrb[20].mxu0 %v2061_v30  ;;  %2015 = vmatmul.mubr.bf16.gmra.mrb[20].mxu1 %v2077_v31 }
  0x4b   :  { %1986 = vmatprep.mubr.bf16.mxu0 %v2062_v32  ;;  %2018 = vmatprep.mubr.bf16.mxu1 %v2078_v33 }
  0x52   :  { %1987 = vmatmul.mubr.bf16.gmra.mrb[24].mxu0 %v2063_v34  ;;  %2019 = vmatmul.mubr.bf16.gmra.mrb[24].mxu1 %v2079_v35 }
  0x53   :  { %1990 = vmatprep.mubr.bf16.mxu0 %v2064_v36  ;;  %2022 = vmatprep.mubr.bf16.mxu1 %v2080_v37 }
  0x5a   :  { %1991 = vmatmul.mubr.bf16.gmra.mrb[28].mxu0 %v2065_v38  ;;  %2023 = vmatmul.mubr.bf16.gmra.mrb[28].mxu1 %v2081_v39 }
  0xf5   :  { %v1964_v40 = vpop.f32.mrb[0].mxu0  ;;  %v2222_v41 = vpop.f32.mrb[0].mxu1 }
  0xf6   :  { %v500_v42 = vpop.f32.mrb[1].mxu0  ;;  %v2224_v43 = vpop.f32.mrb[1].mxu1  ;;  %v1405_v55 = vmul.f32 %v1964_v40, %v1964_v40 }
  0xf7   :  { %v1965_v44 = vpop.f32.mrb[2].mxu0  ;;  %v2226_v45 = vpop.f32.mrb[2].mxu1  ;;  %v1403_v46 = vmul.f32 %v500_v42, %v500_v42 }
  0xf8   :  { %v1723_v47 = vpack.c.bf16 %v1965_v44, %v1964_v40  ;;  %v503_v48 = vpop.f32.mrb[3].mxu0  ;;  %v1803_v49 = vpack.c.bf16 %v2226_v45, %v2222_v41  ;;  %v2230_v50 = vpop.f32.mrb[3].mxu1  ;;  %v1406_v58 = vmul.f32 %v1965_v44, %v1965_v44 }
  0xf9   :  { %v1718_v51 = vpack.c.bf16 %v503_v48, %v500_v42  ;;  %v1334_v52 = vadd.f32 %v503_v48, %v500_v42  ;;  %v1404_v53 = vmul.f32 %v503_v48, %v503_v48  ;;  %v1798_v54 = vpack.c.bf16 %v2230_v50, %v2224_v43 }
  0xfa   :  { %1875 = vst [vmem:[%s2515_s2 + $0x8] sm:$0xff] %v1723_v47   ;;  %1891 = vst [vmem:[%s2515_s2 + $0x88] sm:$0xff] %v1803_v49  }
  0xfb   :  { %1719 = vst [vmem:[%s2515_s2] sm:$0xff] %v1718_v51   ;;  %v1335_v56 = vadd.f32 %v1964_v40, %v1334_v52  ;;  %v1467_v57 = vadd.f32 %v1404_v53, %v1403_v46  ;;  %1890 = vst [vmem:[%s2515_s2 + $0x80] sm:$0xff] %v1798_v54  }
  0xfd   :  { %v1468_v59 = vadd.f32 %v1467_v57, %v1405_v55  ;;  %v1968_v60 = vpop.f32.mrb[4].mxu0  ;;  %v1336_v61 = vadd.f32 %v1965_v44, %v1335_v56  ;;  %v2246_v62 = vpop.f32.mrb[4].mxu1 }
  0xfe   :  { %v516_v63 = vpop.f32.mrb[5].mxu0  ;;  %v2248_v0 = vpop.f32.mrb[5].mxu1  ;;  %v1409_v15 = vmul.f32 %v1968_v60, %v1968_v60 }
  0xff   :  { %v1337_v1 = vadd.f32 %v1336_v61, %v516_v63  ;;  %v1407_v2 = vmul.f32 %v516_v63, %v516_v63  ;;  %v1469_v3 = vadd.f32 %v1468_v59, %v1406_v58  ;;  %v1969_v4 = vpop.f32.mrb[6].mxu0  ;;  %v2250_v5 = vpop.f32.mrb[6].mxu1 }
 0x100   :  { %v1733_v6 = vpack.c.bf16 %v1969_v4, %v1968_v60  ;;  %v519_v7 = vpop.f32.mrb[7].mxu0  ;;  %v1813_v8 = vpack.c.bf16 %v2250_v5, %v2246_v62  ;;  %v2254_v9 = vpop.f32.mrb[7].mxu1  ;;  %v1410_v18 = vmul.f32 %v1969_v4, %v1969_v4 }
 0x101   :  { %v1470_v10 = vadd.f32 %v1469_v3, %v1407_v2  ;;  %v1728_v11 = vpack.c.bf16 %v519_v7, %v516_v63  ;;  %v1338_v12 = vadd.f32 %v1337_v1, %v519_v7  ;;  %v1408_v13 = vmul.f32 %v519_v7, %v519_v7 }
 0x102   :  { %1877 = vst [vmem:[%s2515_s2 + $0x18] sm:$0xff] %v1733_v6   ;;  %1893 = vst [vmem:[%s2515_s2 + $0x98] sm:$0xff] %v1813_v8   ;;  %v1808_v14 = vpack.c.bf16 %v2254_v9, %v2248_v0 }
 0x103   :  { %1876 = vst [vmem:[%s2515_s2 + $0x10] sm:$0xff] %v1728_v11   ;;  %v1339_v16 = vadd.f32 %v1968_v60, %v1338_v12  ;;  %v1471_v17 = vadd.f32 %v1470_v10, %v1408_v13 }
 0x104   :  { %1892 = vst [vmem:[%s2515_s2 + $0x90] sm:$0xff] %v1808_v14  }
 0x105   :  { %v1472_v19 = vadd.f32 %v1471_v17, %v1409_v15  ;;  %v1972_v20 = vpop.f32.mrb[8].mxu0  ;;  %v1340_v21 = vadd.f32 %v1969_v4, %v1339_v16  ;;  %v2270_v22 = vpop.f32.mrb[8].mxu1 }
 0x106   :  { %v532_v23 = vpop.f32.mrb[9].mxu0  ;;  %v2272_v24 = vpop.f32.mrb[9].mxu1  ;;  %v1413_v39 = vmul.f32 %v1972_v20, %v1972_v20 }
 0x107   :  { %v1341_v25 = vadd.f32 %v1340_v21, %v532_v23  ;;  %v1411_v26 = vmul.f32 %v532_v23, %v532_v23  ;;  %v1473_v27 = vadd.f32 %v1472_v19, %v1410_v18  ;;  %v1973_v28 = vpop.f32.mrb[10].mxu0  ;;  %v2274_v29 = vpop.f32.mrb[10].mxu1 }
 0x108   :  { %v1743_v30 = vpack.c.bf16 %v1973_v28, %v1972_v20  ;;  %v535_v31 = vpop.f32.mrb[11].mxu0  ;;  %v1823_v32 = vpack.c.bf16 %v2274_v29, %v2270_v22  ;;  %v2278_v33 = vpop.f32.mrb[11].mxu1  ;;  %v1414_v44 = vmul.f32 %v1973_v28, %v1973_v28 }
 0x109   :  { %v1474_v34 = vadd.f32 %v1473_v27, %v1411_v26  ;;  %v1738_v35 = vpack.c.bf16 %v535_v31, %v532_v23  ;;  %v1342_v36 = vadd.f32 %v1341_v25, %v535_v31  ;;  %v1412_v37 = vmul.f32 %v535_v31, %v535_v31 }
 0x10a   :  { %1879 = vst [vmem:[%s2515_s2 + $0x28] sm:$0xff] %v1743_v30   ;;  %1895 = vst [vmem:[%s2515_s2 + $0xa8] sm:$0xff] %v1823_v32   ;;  %v1818_v38 = vpack.c.bf16 %v2278_v33, %v2272_v24 }
 0x10b   :  { %1878 = vst [vmem:[%s2515_s2 + $0x20] sm:$0xff] %v1738_v35   ;;  %v1343_v40 = vadd.f32 %v1972_v20, %v1342_v36  ;;  %v1475_v42 = vadd.f32 %v1474_v34, %v1412_v37 }
 0x10c   :  { %1894 = vst [vmem:[%s2515_s2 + $0xa0] sm:$0xff] %v1818_v38  }
 0x10d   :  { %v1476_v46 = vadd.f32 %v1475_v42, %v1413_v39  ;;  %v1976_v47 = vpop.f32.mrb[12].mxu0  ;;  %v1344_v48 = vadd.f32 %v1973_v28, %v1343_v40  ;;  %v2294_v49 = vpop.f32.mrb[12].mxu1 }
 0x10e   :  { %v548_v51 = vpop.f32.mrb[13].mxu0  ;;  %v2296_v52 = vpop.f32.mrb[13].mxu1  ;;  %v1417_v6 = vmul.f32 %v1976_v47, %v1976_v47 }
 0x10f   :  { %v1345_v53 = vadd.f32 %v1344_v48, %v548_v51  ;;  %v1415_v54 = vmul.f32 %v548_v51, %v548_v51  ;;  %v1477_v55 = vadd.f32 %v1476_v46, %v1414_v44  ;;  %v1977_v56 = vpop.f32.mrb[14].mxu0  ;;  %v2298_v57 = vpop.f32.mrb[14].mxu1 }
 0x110   :  { %v1753_v58 = vpack.c.bf16 %v1977_v56, %v1976_v47  ;;  %v551_v59 = vpop.f32.mrb[15].mxu0  ;;  %v1833_v60 = vpack.c.bf16 %v2298_v57, %v2294_v49  ;;  %v2302_v61 = vpop.f32.mrb[15].mxu1  ;;  %v1418_v10 = vmul.f32 %v1977_v56, %v1977_v56 }
 0x111   :  { %v1478_v63 = vadd.f32 %v1477_v55, %v1415_v54  ;;  %v1748_v1 = vpack.c.bf16 %v551_v59, %v548_v51  ;;  %v1346_v2 = vadd.f32 %v1345_v53, %v551_v59  ;;  %v1416_v3 = vmul.f32 %v551_v59, %v551_v59 }
 0x112   :  { %1881 = vst [vmem:[%s2515_s2 + $0x38] sm:$0xff] %v1753_v58   ;;  %1897 = vst [vmem:[%s2515_s2 + $0xb8] sm:$0xff] %v1833_v60   ;;  %v1828_v4 = vpack.c.bf16 %v2302_v61, %v2296_v52 }
 0x113   :  { %1880 = vst [vmem:[%s2515_s2 + $0x30] sm:$0xff] %v1748_v1   ;;  %v1347_v7 = vadd.f32 %v1976_v47, %v1346_v2  ;;  %v1479_v8 = vadd.f32 %v1478_v63, %v1416_v3 }
 0x114   :  { %1896 = vst [vmem:[%s2515_s2 + $0xb0] sm:$0xff] %v1828_v4  }
 0x115   :  { %v1480_v11 = vadd.f32 %v1479_v8, %v1417_v6  ;;  %v1980_v12 = vpop.f32.mrb[16].mxu0  ;;  %v1348_v13 = vadd.f32 %v1977_v56, %v1347_v7  ;;  %v2318_v14 = vpop.f32.mrb[16].mxu1 }
 0x116   :  { %v564_v15 = vpop.f32.mrb[17].mxu0  ;;  %v2320_v16 = vpop.f32.mrb[17].mxu1  ;;  %v1421_v35 = vmul.f32 %v1980_v12, %v1980_v12 }
 0x117   :  { %v1349_v17 = vadd.f32 %v1348_v13, %v564_v15  ;;  %v1419_v18 = vmul.f32 %v564_v15, %v564_v15  ;;  %v1481_v19 = vadd.f32 %v1480_v11, %v1418_v10  ;;  %v1981_v20 = vpop.f32.mrb[18].mxu0  ;;  %v2322_v21 = vpop.f32.mrb[18].mxu1 }
 0x118   :  { %v1763_v23 = vpack.c.bf16 %v1981_v20, %v1980_v12  ;;  %v567_v25 = vpop.f32.mrb[19].mxu0  ;;  %v1843_v26 = vpack.c.bf16 %v2322_v21, %v2318_v14  ;;  %v2326_v27 = vpop.f32.mrb[19].mxu1  ;;  %v1422_v38 = vmul.f32 %v1981_v20, %v1981_v20 }
 0x119   :  { %v1482_v28 = vadd.f32 %v1481_v19, %v1419_v18  ;;  %v1758_v30 = vpack.c.bf16 %v567_v25, %v564_v15  ;;  %v1350_v31 = vadd.f32 %v1349_v17, %v567_v25  ;;  %v1420_v32 = vmul.f32 %v567_v25, %v567_v25 }
 0x11a   :  { %1883 = vst [vmem:[%s2515_s2 + $0x48] sm:$0xff] %v1763_v23   ;;  %1899 = vst [vmem:[%s2515_s2 + $0xc8] sm:$0xff] %v1843_v26   ;;  %v1838_v34 = vpack.c.bf16 %v2326_v27, %v2320_v16 }
 0x11b   :  { %1882 = vst [vmem:[%s2515_s2 + $0x40] sm:$0xff] %v1758_v30   ;;  %v1351_v36 = vadd.f32 %v1980_v12, %v1350_v31  ;;  %v1483_v37 = vadd.f32 %v1482_v28, %v1420_v32 }
 0x11c   :  { %1898 = vst [vmem:[%s2515_s2 + $0xc0] sm:$0xff] %v1838_v34  }
 0x11d   :  { %v1484_v39 = vadd.f32 %v1483_v37, %v1421_v35  ;;  %v1984_v40 = vpop.f32.mrb[20].mxu0  ;;  %v1352_v42 = vadd.f32 %v1981_v20, %v1351_v36  ;;  %v2342_v44 = vpop.f32.mrb[20].mxu1 }
 0x11e   :  { %v580_v46 = vpop.f32.mrb[21].mxu0  ;;  %v2344_v47 = vpop.f32.mrb[21].mxu1  ;;  %v1425_v6 = vmul.f32 %v1984_v40, %v1984_v40 }
 0x11f   :  { %v1353_v48 = vadd.f32 %v1352_v42, %v580_v46  ;;  %v1423_v51 = vmul.f32 %v580_v46, %v580_v46  ;;  %v1485_v53 = vadd.f32 %v1484_v39, %v1422_v38  ;;  %v1985_v54 = vpop.f32.mrb[22].mxu0  ;;  %v2346_v55 = vpop.f32.mrb[22].mxu1 }
 0x120   :  { %v1773_v56 = vpack.c.bf16 %v1985_v54, %v1984_v40  ;;  %v583_v58 = vpop.f32.mrb[23].mxu0  ;;  %v1853_v59 = vpack.c.bf16 %v2346_v55, %v2342_v44  ;;  %v2350_v60 = vpop.f32.mrb[23].mxu1  ;;  %v1426_v10 = vmul.f32 %v1985_v54, %v1985_v54 }
 0x121   :  { %v1486_v63 = vadd.f32 %v1485_v53, %v1423_v51  ;;  %v1768_v1 = vpack.c.bf16 %v583_v58, %v580_v46  ;;  %v1354_v2 = vadd.f32 %v1353_v48, %v583_v58  ;;  %v1424_v3 = vmul.f32 %v583_v58, %v583_v58 }
 0x122   :  { %1885 = vst [vmem:[%s2515_s2 + $0x58] sm:$0xff] %v1773_v56   ;;  %1901 = vst [vmem:[%s2515_s2 + $0xd8] sm:$0xff] %v1853_v59   ;;  %v1848_v4 = vpack.c.bf16 %v2350_v60, %v2344_v47 }
 0x123   :  { %1884 = vst [vmem:[%s2515_s2 + $0x50] sm:$0xff] %v1768_v1   ;;  %v1355_v7 = vadd.f32 %v1984_v40, %v1354_v2  ;;  %v1487_v8 = vadd.f32 %v1486_v63, %v1424_v3 }
 0x124   :  { %1900 = vst [vmem:[%s2515_s2 + $0xd0] sm:$0xff] %v1848_v4  }
 0x125   :  { %v1488_v11 = vadd.f32 %v1487_v8, %v1425_v6  ;;  %v1988_v12 = vpop.f32.mrb[24].mxu0  ;;  %v1356_v13 = vadd.f32 %v1985_v54, %v1355_v7  ;;  %v2366_v15 = vpop.f32.mrb[24].mxu1 }
 0x126   :  { %v596_v17 = vpop.f32.mrb[25].mxu0  ;;  %v2368_v18 = vpop.f32.mrb[25].mxu1  ;;  %v1429_v39 = vmul.f32 %v1988_v12, %v1988_v12 }
 0x127   :  { %v1357_v19 = vadd.f32 %v1356_v13, %v596_v17  ;;  %v1427_v20 = vmul.f32 %v596_v17, %v596_v17  ;;  %v1489_v23 = vadd.f32 %v1488_v11, %v1426_v10  ;;  %v1989_v25 = vpop.f32.mrb[26].mxu0  ;;  %v2370_v26 = vpop.f32.mrb[26].mxu1 }
 0x128   :  { %v1783_v28 = vpack.c.bf16 %v1989_v25, %v1988_v12  ;;  %v599_v30 = vpop.f32.mrb[27].mxu0  ;;  %v1863_v31 = vpack.c.bf16 %v2370_v26, %v2366_v15  ;;  %v2374_v32 = vpop.f32.mrb[27].mxu1  ;;  %v1430_v46 = vmul.f32 %v1989_v25, %v1989_v25 }
 0x129   :  { %v1490_v34 = vadd.f32 %v1489_v23, %v1427_v20  ;;  %v1778_v35 = vpack.c.bf16 %v599_v30, %v596_v17  ;;  %v1358_v36 = vadd.f32 %v1357_v19, %v599_v30  ;;  %v1428_v37 = vmul.f32 %v599_v30, %v599_v30 }
 0x12a   :  { %1887 = vst [vmem:[%s2515_s2 + $0x68] sm:$0xff] %v1783_v28   ;;  %1903 = vst [vmem:[%s2515_s2 + $0xe8] sm:$0xff] %v1863_v31   ;;  %v1858_v38 = vpack.c.bf16 %v2374_v32, %v2368_v18  ;;  %v1435_v31 = vmul.f32 %v2224_v43, %v2224_v43 }
 0x12b   :  { %1886 = vst [vmem:[%s2515_s2 + $0x60] sm:$0xff] %v1778_v35   ;;  %v1359_v40 = vadd.f32 %v1988_v12, %v1358_v36  ;;  %v1491_v42 = vadd.f32 %v1490_v34, %v1428_v37 }
 0x12c   :  { %1902 = vst [vmem:[%s2515_s2 + $0xe0] sm:$0xff] %v1858_v38   ;;  %v1436_v38 = vmul.f32 %v2230_v50, %v2230_v50 }
 0x12d   :  { %v1492_v48 = vadd.f32 %v1491_v42, %v1429_v39  ;;  %v1992_v51 = vpop.f32.mrb[28].mxu0  ;;  %v1360_v53 = vadd.f32 %v1989_v25, %v1359_v40  ;;  %v2390_v54 = vpop.f32.mrb[28].mxu1  ;;  %v1437_v39 = vmul.f32 %v2222_v41, %v2222_v41 }
 0x12e   :  { %v612_v56 = vpop.f32.mrb[29].mxu0  ;;  %v2392_v58 = vpop.f32.mrb[29].mxu1  ;;  %v1433_v19 = vmul.f32 %v1992_v51, %v1992_v51 }
 0x12f   :  { %v1361_v59 = vadd.f32 %v1360_v53, %v612_v56  ;;  %v1431_v63 = vmul.f32 %v612_v56, %v612_v56  ;;  %v1493_v1 = vadd.f32 %v1492_v48, %v1430_v46  ;;  %v1993_v2 = vpop.f32.mrb[30].mxu0  ;;  %v2394_v3 = vpop.f32.mrb[30].mxu1  ;;  %v1438_v46 = vmul.f32 %v2226_v45, %v2226_v45 }
 0x130   :  { %v1793_v4 = vpack.c.bf16 %v1993_v2, %v1992_v51  ;;  %v615_v6 = vpop.f32.mrb[31].mxu0  ;;  %v1873_v7 = vpack.c.bf16 %v2394_v3, %v2390_v54  ;;  %v2398_v8 = vpop.f32.mrb[31].mxu1  ;;  %v1434_v25 = vmul.f32 %v1993_v2, %v1993_v2 }
 0x131   :  { %v1494_v10 = vadd.f32 %v1493_v1, %v1431_v63  ;;  %v1788_v11 = vpack.c.bf16 %v615_v6, %v612_v56  ;;  %v1362_v12 = vadd.f32 %v1361_v59, %v615_v6  ;;  %v1432_v13 = vmul.f32 %v615_v6, %v615_v6 }
 0x132   :  { %1889 = vst [vmem:[%s2515_s2 + $0x78] sm:$0xff] %v1793_v4   ;;  %1905 = vst [vmem:[%s2515_s2 + $0xf8] sm:$0xff] %v1873_v7   ;;  %v1868_v17 = vpack.c.bf16 %v2398_v8, %v2392_v58  ;;  %v1440_v63 = vmul.f32 %v2254_v9, %v2254_v9 }
 0x133   :  { %1888 = vst [vmem:[%s2515_s2 + $0x70] sm:$0xff] %v1788_v11   ;;  %v1363_v20 = vadd.f32 %v1992_v51, %v1362_v12  ;;  %v1495_v23 = vadd.f32 %v1494_v10, %v1432_v13  ;;  %v1444_v12 = vmul.f32 %v2278_v33, %v2278_v33 }
 0x134   :  { %1904 = vst [vmem:[%s2515_s2 + $0xf0] sm:$0xff] %v1868_v17  }
 0x135   :  { %v1496_v28 = vadd.f32 %v1495_v23, %v1433_v19  ;;  %v1364_v30 = vadd.f32 %v1993_v2, %v1363_v20 }
 0x137   :  { %v1365_v34 = vadd.f32 %v1364_v30, %v2224_v43  ;;  %v1497_v35 = vadd.f32 %v1496_v28, %v1434_v25  ;;  %v1439_v43 = vmul.f32 %v2248_v0, %v2248_v0  ;;  %v1448_v30 = vmul.f32 %v2302_v61, %v2302_v61 }
 0x139   :  { %v1498_v36 = vadd.f32 %v1497_v35, %v1435_v31  ;;  %v1366_v37 = vadd.f32 %v1365_v34, %v2230_v50 }
 0x13b   :  { %v1367_v40 = vadd.f32 %v2222_v41, %v1366_v37  ;;  %v1499_v42 = vadd.f32 %v1498_v36, %v1436_v38  ;;  %v1441_v41 = vmul.f32 %v2246_v62, %v2246_v62 }
 0x13d   :  { %v1500_v48 = vadd.f32 %v1499_v42, %v1437_v39  ;;  %v1368_v51 = vadd.f32 %v2226_v45, %v1367_v40  ;;  %v1442_v45 = vmul.f32 %v2250_v5, %v2250_v5  ;;  %v1452_v40 = vmul.f32 %v2326_v27, %v2326_v27 }
 0x13f   :  { %v1369_v53 = vadd.f32 %v1368_v51, %v2248_v0  ;;  %v1501_v56 = vadd.f32 %v1500_v48, %v1438_v46  ;;  %v1443_v0 = vmul.f32 %v2272_v24, %v2272_v24 }
 0x141   :  { %v1502_v59 = vadd.f32 %v1501_v56, %v1439_v43  ;;  %v1370_v50 = vadd.f32 %v1369_v53, %v2254_v9 }
 0x143   :  { %v1371_v1 = vadd.f32 %v2246_v62, %v1370_v50  ;;  %v1503_v2 = vadd.f32 %v1502_v59, %v1440_v63  ;;  %v1445_v62 = vmul.f32 %v2270_v22, %v2270_v22  ;;  %v1456_v59 = vmul.f32 %v2350_v60, %v2350_v60 }
 0x145   :  { %v1504_v4 = vadd.f32 %v1503_v2, %v1441_v41  ;;  %v1372_v6 = vadd.f32 %v2250_v5, %v1371_v1  ;;  %v1446_v5 = vmul.f32 %v2274_v29, %v2274_v29 }
 0x147   :  { %v1373_v7 = vadd.f32 %v1372_v6, %v2272_v24  ;;  %v1505_v10 = vadd.f32 %v1504_v4, %v1442_v45  ;;  %v1447_v24 = vmul.f32 %v2296_v52, %v2296_v52  ;;  %v1460_v6 = vmul.f32 %v2374_v32, %v2374_v32 }
 0x149   :  { %v1506_v11 = vadd.f32 %v1505_v10, %v1443_v0  ;;  %v1374_v9 = vadd.f32 %v1373_v7, %v2278_v33 }
 0x14b   :  { %v1375_v13 = vadd.f32 %v2270_v22, %v1374_v9  ;;  %v1507_v17 = vadd.f32 %v1506_v11, %v1444_v12  ;;  %v1449_v22 = vmul.f32 %v2294_v49, %v2294_v49 }
 0x14d   :  { %v1508_v19 = vadd.f32 %v1507_v17, %v1445_v62  ;;  %v1376_v20 = vadd.f32 %v2274_v29, %v1375_v13  ;;  %v1450_v29 = vmul.f32 %v2298_v57, %v2298_v57  ;;  %v1464_v13 = vmul.f32 %v2398_v8, %v2398_v8 }
 0x14f   :  { %v1377_v23 = vadd.f32 %v1376_v20, %v2296_v52  ;;  %v1509_v25 = vadd.f32 %v1508_v19, %v1446_v5  ;;  %v1451_v52 = vmul.f32 %v2320_v16, %v2320_v16 }
 0x151   :  { %v1510_v28 = vadd.f32 %v1509_v25, %v1447_v24  ;;  %v1378_v33 = vadd.f32 %v1377_v23, %v2302_v61 }
 0x153   :  { %v1379_v31 = vadd.f32 %v2294_v49, %v1378_v33  ;;  %v1511_v34 = vadd.f32 %v1510_v28, %v1448_v30  ;;  %v1453_v49 = vmul.f32 %v2318_v14, %v2318_v14 }
 0x155   :  { %v1512_v35 = vadd.f32 %v1511_v34, %v1449_v22  ;;  %v1380_v36 = vadd.f32 %v2298_v57, %v1379_v31  ;;  %v1454_v57 = vmul.f32 %v2322_v21, %v2322_v21 }
 0x157   :  { %v1381_v37 = vadd.f32 %v1380_v36, %v2320_v16  ;;  %v1513_v38 = vadd.f32 %v1512_v35, %v1450_v29  ;;  %v1455_v16 = vmul.f32 %v2344_v47, %v2344_v47 }
 0x159   :  { %v1514_v39 = vadd.f32 %v1513_v38, %v1451_v52  ;;  %v1382_v61 = vadd.f32 %v1381_v37, %v2326_v27 }
 0x15b   :  { %v1383_v42 = vadd.f32 %v2318_v14, %v1382_v61  ;;  %v1515_v46 = vadd.f32 %v1514_v39, %v1452_v40  ;;  %v1457_v14 = vmul.f32 %v2342_v44, %v2342_v44 }
 0x15d   :  { %v1516_v48 = vadd.f32 %v1515_v46, %v1453_v49  ;;  %v1384_v51 = vadd.f32 %v2322_v21, %v1383_v42  ;;  %v1458_v21 = vmul.f32 %v2346_v55, %v2346_v55 }
 0x15f   :  { %v1385_v43 = vadd.f32 %v1384_v51, %v2344_v47  ;;  %v1517_v53 = vadd.f32 %v1516_v48, %v1454_v57  ;;  %v1459_v47 = vmul.f32 %v2368_v18, %v2368_v18 }
 0x161   :  { %v1518_v56 = vadd.f32 %v1517_v53, %v1455_v16  ;;  %v1386_v27 = vadd.f32 %v1385_v43, %v2350_v60 }
 0x163   :  { %v1387_v50 = vadd.f32 %v2342_v44, %v1386_v27  ;;  %v1519_v63 = vadd.f32 %v1518_v56, %v1456_v59  ;;  %v1461_v44 = vmul.f32 %v2366_v15, %v2366_v15 }
 0x165   :  { %v1520_v41 = vadd.f32 %v1519_v63, %v1457_v14  ;;  %v1388_v1 = vadd.f32 %v2346_v55, %v1387_v50  ;;  %v1462_v55 = vmul.f32 %v2370_v26, %v2370_v26 }
 0x167   :  { %v1389_v2 = vadd.f32 %v1388_v1, %v2368_v18  ;;  %v1521_v45 = vadd.f32 %v1520_v41, %v1458_v21  ;;  %v1463_v18 = vmul.f32 %v2392_v58, %v2392_v58 }
 0x169   :  { %v1522_v4 = vadd.f32 %v1521_v45, %v1459_v47  ;;  %v1390_v60 = vadd.f32 %v1389_v2, %v2374_v32 }
 0x16b   :  { %v1391_v0 = vadd.f32 %v2366_v15, %v1390_v60  ;;  %v1523_v7 = vadd.f32 %v1522_v4, %v1460_v6  ;;  %v1465_v15 = vmul.f32 %v2390_v54, %v2390_v54 }
 0x16d   :  { %v1524_v10 = vadd.f32 %v1523_v7, %v1461_v44  ;;  %v1392_v11 = vadd.f32 %v2370_v26, %v1391_v0  ;;  %v1466_v26 = vmul.f32 %v2394_v3, %v2394_v3 }
 0x16f   :  { %v1393_v9 = vadd.f32 %v1392_v11, %v2392_v58  ;;  %v1525_v12 = vadd.f32 %v1524_v10, %v1462_v55 }
 0x171   :  { %v1526_v62 = vadd.f32 %v1525_v12, %v1463_v18  ;;  %v1394_v32 = vadd.f32 %v1393_v9, %v2398_v8 }
 0x173   :  { %v1395_v17 = vadd.f32 %v2390_v54, %v1394_v32  ;;  %v1527_v5 = vadd.f32 %v1526_v62, %v1464_v13 }
 0x175   :  { %v1396_v19 = vadd.f32 %v2394_v3, %v1395_v17  ;;  %v1528_v20 = vadd.f32 %v1527_v5, %v1465_v15 }
 0x177   :  { %v1397_v58 = vrot.slane %v1396_v19, 4  ;;  %v1529_v24 = vadd.f32 %v1528_v20, %v1466_v26 }
 0x179   :  { %v1398_v23 = vadd.f32 %v1397_v58, %v1396_v19  ;;  %v1530_v25 = vrot.slane %v1529_v24, 4 }
 0x17b   :  { %v1399_v28 = vrot.slane %v1398_v23, 2  ;;  %v1531_v33 = vadd.f32 %v1530_v25, %v1529_v24 }
 0x17d   :  { %v1400_v30 = vadd.f32 %v1399_v28, %v1398_v23  ;;  %v1532_v8 = vrot.slane %v1531_v33, 2 }
 0x17f   :  { %v1401_v22 = vrot.slane %v1400_v30, 1  ;;  %v1533_v31 = vadd.f32 %v1532_v8, %v1531_v33 }
 0x181   :  { %v1534_v34 = vrot.slane %v1533_v31, 1  ;;  %v1402_v54 = vadd.f32 %v1401_v22, %v1400_v30 }
 0x183   :  { %v1535_v29 = vadd.f32 %v1534_v34, %v1533_v31 }
 0x185   :  { %v1537_v35 = vsel %vm1536_vm0, %v1402_v54, %v1535_v29 }
 0x186   :  { %1538 = vst [vmem:[%s2516_s3] sm:$0x3] %v1537_v35 }

</bundles_post_ra>
